<compile_context>
chip_gen: v7x
topology: tpu7x:2x2x1
jax: 0.10.0
libtpu: 0.0.40
codegen_flags: <defaults>
</compile_context>

<pallas_src>
import jax
import jax.numpy as jnp
from jax.experimental import pallas as pl
from jax.experimental.pallas import tpu as pltpu


_HIDDEN = 128   # hidden width of layer1 / layer2
_LANE = 128     # TPU lane width: layer-3 compute is padded to this in VMEM


def _round_up(n, m):
    return ((n + m - 1) // m) * m


def policy_net_kernel(x_ref, w1_ref, b1_ref, w2_ref, b2_ref, w3_ref, b3_ref,
                      out_ref):
    """Fused 3-layer MLP + softmax over one (TB, n_obs) batch tile.

    Weights/biases use a constant index_map, so they stay VMEM-resident across
    all grid steps; only the x tile and the (narrow) out tile move per step.
    Matmul inputs are bf16, accumulation is f32; bias/ReLU/softmax are f32."""
    x = x_ref[...]                                   # bf16 (tb, n_obs)

    # layer1 + ReLU  (MXU matmul, f32 accumulate)
    h1 = jnp.dot(x, w1_ref[...], preferred_element_type=jnp.float32)
    h1 = jnp.maximum(h1 + b1_ref[...], 0.0)

    # layer2 + ReLU
    h2 = jnp.dot(h1.astype(jnp.bfloat16), w2_ref[...],
                 preferred_element_type=jnp.float32)
    h2 = jnp.maximum(h2 + b2_ref[...], 0.0)

    # layer3 (logits).  w3/b3 arrive padded to 128 lanes; pad columns have
    # zero weight and a -1e30 bias, so exp(pad - max) == 0 exactly and the
    # padded softmax equals the unpadded one on the real columns.
    logits = jnp.dot(h2.astype(jnp.bfloat16), w3_ref[...],
                     preferred_element_type=jnp.float32)
    logits = logits + b3_ref[...]

    # numerically-stable softmax across the (padded) action lanes
    m = jnp.max(logits, axis=-1, keepdims=True)
    e = jnp.exp(logits - m)
    denom = jnp.sum(e, axis=-1, keepdims=True)
    probs = e / denom                                # exact divide (DMA-bound)

    # narrow store: only the real action columns go back to HBM
    n_act = out_ref.shape[-1]
    out_ref[...] = probs[:, :n_act].astype(out_ref.dtype)


def policy_network_forward(x, params, *, block_b=1024):
    """PolicyNetwork forward pass: softmax(L3(relu(L2(relu(L1(x))))))."""
    w1, b1, w2, b2, w3, b3 = params
    x = x.astype(jnp.float32)
    B, n_obs = x.shape
    H = w1.shape[1]
    n_actions = w3.shape[1]

    # Lane-dense layer-3 *compute*: pad to 128 output columns in VMEM only.
    # Zero weights plus a -1e30 bias make the padded logits vanish under
    # softmax (exp underflows to exactly 0), so probs on the real columns are
    # numerically identical to the unpadded softmax.
    w3p = jnp.zeros((H, _LANE), jnp.float32).at[:, :n_actions].set(w3)
    b3p = jnp.full((1, _LANE), -1e30, jnp.float32).at[:, :n_actions].set(b3)

    # bf16 matmul inputs; biases stay f32 (added to the f32 accumulator).
    x_bf = x.astype(jnp.bfloat16)
    w1_bf = w1.astype(jnp.bfloat16)
    w2_bf = w2.astype(jnp.bfloat16)
    w3p_bf = w3p.astype(jnp.bfloat16)

    # Batch tile: big enough to amortize ~0.35 us/step overhead, never much
    # bigger than half the batch so that batches larger than one tile always
    # produce >= 2 grid steps (keeps both v7x TensorCores busy via the
    # "parallel" axis).  VMEM: at tb=1024, bf16 x + f32 h-tiles + narrow out
    # plus ~0.05 MiB of resident bf16 weights is far under the 32 MiB scoped
    # default on every generation.
    half_b = (B + 1) // 2
    tb = min(block_b, max(8, _round_up(half_b, 8)))
    grid = (pl.cdiv(B, tb),)

    resident = lambda i: (0, 0)     # weights/biases: same block every step
    batch_tile = lambda i: (i, 0)   # x / out: march down the batch

    flops = 2 * B * (n_obs * H + H * H + H * _LANE)
    bytes_accessed = (2 * B * n_obs                        # bf16 x in
                      + 4 * B * n_actions                  # f32 probs out
                      + 2 * (n_obs * H + H * H + H * _LANE)  # bf16 weights
                      + 4 * (2 * H + _LANE))               # f32 biases
    cost = pl.CostEstimate(flops=flops,
                           transcendentals=B * _LANE,
                           bytes_accessed=bytes_accessed)

    probs = pl.pallas_call(
        policy_net_kernel,
        out_shape=jax.ShapeDtypeStruct((B, n_actions), jnp.float32),
        grid=grid,
        in_specs=[
            pl.BlockSpec((tb, n_obs), batch_tile),   # x (bf16)
            pl.BlockSpec((n_obs, H), resident),      # w1 (bf16)
            pl.BlockSpec((1, H), resident),          # b1 (f32)
            pl.BlockSpec((H, H), resident),          # w2 (bf16)
            pl.BlockSpec((1, H), resident),          # b2 (f32)
            pl.BlockSpec((H, _LANE), resident),      # w3 padded (bf16)
            pl.BlockSpec((1, _LANE), resident),      # b3 padded (f32)
        ],
        out_specs=pl.BlockSpec((tb, n_actions), batch_tile),
        compiler_params=pltpu.CompilerParams(
            dimension_semantics=("parallel",)),
        cost_estimate=cost,
    )(x_bf, w1_bf, b1, w2_bf, b2, w3p_bf, b3p)

    return probs


def init_params(key, n_observations, n_actions):
    """torch.nn.Linear-style init: U(-1/sqrt(fan_in), 1/sqrt(fan_in)).
    Weights returned already transposed to (in, out)."""
    def linear_init(k, fan_in, fan_out):
        kw, kb = jax.random.split(k)
        bound = 1.0 / jnp.sqrt(jnp.float32(fan_in))
        w = jax.random.uniform(kw, (fan_in, fan_out), jnp.float32, -bound, bound)
        b = jax.random.uniform(kb, (1, fan_out), jnp.float32, -bound, bound)
        return w, b

    k1, k2, k3 = jax.random.split(key, 3)
    w1, b1 = linear_init(k1, n_observations, _HIDDEN)
    w2, b2 = linear_init(k2, _HIDDEN, _HIDDEN)
    w3, b3 = linear_init(k3, _HIDDEN, n_actions)
    return (w1, b1, w2, b2, w3, b3)


def reference_forward(x, params):
    """Pure-JAX f32 reference for sanity checking."""
    w1, b1, w2, b2, w3, b3 = params
    h1 = jnp.maximum(x @ w1 + b1, 0.0)
    h2 = jnp.maximum(h1 @ w2 + b2, 0.0)
    logits = h2 @ w3 + b3
    return jax.nn.softmax(logits, axis=-1)


if __name__ == "__main__":
    # Grid-world-ish sizes: 16-dim state, 4 actions, batch of 8 states.
    # (At this size the kernel is overhead-bound; it is written to scale to
    # rollout-sized batches via the batch grid + narrow output.)
    n_observations = 16
    n_actions = 4
    batch = 8

    key = jax.random.PRNGKey(0)
    k_params, k_x = jax.random.split(key)

    params = init_params(k_params, n_observations, n_actions)
    x = jax.random.normal(k_x, (batch, n_observations), dtype=jnp.float32)

    probs = policy_network_forward(x, params)
    probs = jax.block_until_ready(probs)

    ref = reference_forward(x, params)
    assert probs.shape == (batch, n_actions)
    # bf16 matmul inputs (f32 accumulation) -> modest tolerance vs f32 ref.
    assert jnp.allclose(probs, ref, atol=2e-2, rtol=2e-2)
    # exact softmax divide: each row sums to ~1 at f32 precision.
    assert jnp.allclose(jnp.sum(probs, axis=-1), 1.0, atol=1e-3)

    print("KERNEL_OK")
</pallas_src>

<mosaic_0001>
module attributes {stable_mosaic.version = 11 : i64} {
  func.func @policy_net_kernel(%arg0: i32, %arg1: memref<8x16xbf16, #tpu.memory_space<vmem>>, %arg2: memref<16x128xbf16, #tpu.memory_space<vmem>>, %arg3: memref<1x128xf32, #tpu.memory_space<vmem>>, %arg4: memref<128x128xbf16, #tpu.memory_space<vmem>>, %arg5: memref<1x128xf32, #tpu.memory_space<vmem>>, %arg6: memref<128x128xbf16, #tpu.memory_space<vmem>>, %arg7: memref<1x128xf32, #tpu.memory_space<vmem>>, %arg8: memref<8x4xf32, #tpu.memory_space<vmem>>) attributes {dimension_semantics = [#tpu.dimension_semantics<parallel>], iteration_bounds = array<i64: 1>, scalar_prefetch = 0 : i64, scratch_operands = 0 : i64, tpu.core_type = #tpu.core_type<tc>, window_params = [{transform_indices = @transform_0, window_bounds = array<i64: 8, 16>}, {pipeline_mode = #tpu.pipeline_mode<synchronous>, transform_indices = @transform_1, window_bounds = array<i64: 16, 128>}, {pipeline_mode = #tpu.pipeline_mode<synchronous>, transform_indices = @transform_2, window_bounds = array<i64: 1, 128>}, {pipeline_mode = #tpu.pipeline_mode<synchronous>, transform_indices = @transform_3, window_bounds = array<i64: 128, 128>}, {pipeline_mode = #tpu.pipeline_mode<synchronous>, transform_indices = @transform_4, window_bounds = array<i64: 1, 128>}, {pipeline_mode = #tpu.pipeline_mode<synchronous>, transform_indices = @transform_5, window_bounds = array<i64: 128, 128>}, {pipeline_mode = #tpu.pipeline_mode<synchronous>, transform_indices = @transform_6, window_bounds = array<i64: 1, 128>}, {transform_indices = @transform_7, window_bounds = array<i64: 8, 4>}]} {
    %c0 = arith.constant 0 : index
    %c0_0 = arith.constant 0 : index
    %0 = vector.load %arg1[%c0, %c0_0] : memref<8x16xbf16, #tpu.memory_space<vmem>>, vector<8x16xbf16>
    %c0_1 = arith.constant 0 : index
    %c0_2 = arith.constant 0 : index
    %1 = vector.load %arg2[%c0_1, %c0_2] : memref<16x128xbf16, #tpu.memory_space<vmem>>, vector<16x128xbf16>
    %cst = arith.constant dense<0.000000e+00> : vector<8x128xf32>
    %2 = tpu.matmul %0, %1, %cst {dimension_numbers = #tpu.dot_dimension_numbers<[1], [0], [0], [1], [0, 0, 1, 1], [], []>} : vector<8x16xbf16>, vector<16x128xbf16>, vector<8x128xf32> -> vector<8x128xf32>
    %c0_3 = arith.constant 0 : index
    %c0_4 = arith.constant 0 : index
    %3 = vector.load %arg3[%c0_3, %c0_4] : memref<1x128xf32, #tpu.memory_space<vmem>>, vector<1x128xf32>
    %4 = vector.broadcast %3 : vector<1x128xf32> to vector<8x128xf32>
    %5 = arith.addf %2, %4 : vector<8x128xf32>
    %cst_5 = arith.constant 0.000000e+00 : f32
    %6 = vector.broadcast %cst_5 : f32 to vector<8x128xf32>
    %7 = arith.maximumf %5, %6 : vector<8x128xf32>
    %8 = arith.truncf %7 : vector<8x128xf32> to vector<8x128xbf16>
    %c0_6 = arith.constant 0 : index
    %c0_7 = arith.constant 0 : index
    %9 = vector.load %arg4[%c0_6, %c0_7] : memref<128x128xbf16, #tpu.memory_space<vmem>>, vector<128x128xbf16>
    %cst_8 = arith.constant dense<0.000000e+00> : vector<8x128xf32>
    %10 = tpu.matmul %8, %9, %cst_8 {dimension_numbers = #tpu.dot_dimension_numbers<[1], [0], [0], [1], [0, 0, 1, 1], [], []>} : vector<8x128xbf16>, vector<128x128xbf16>, vector<8x128xf32> -> vector<8x128xf32>
    %c0_9 = arith.constant 0 : index
    %c0_10 = arith.constant 0 : index
    %11 = vector.load %arg5[%c0_9, %c0_10] : memref<1x128xf32, #tpu.memory_space<vmem>>, vector<1x128xf32>
    %12 = vector.broadcast %11 : vector<1x128xf32> to vector<8x128xf32>
    %13 = arith.addf %10, %12 : vector<8x128xf32>
    %cst_11 = arith.constant 0.000000e+00 : f32
    %14 = vector.broadcast %cst_11 : f32 to vector<8x128xf32>
    %15 = arith.maximumf %13, %14 : vector<8x128xf32>
    %16 = arith.truncf %15 : vector<8x128xf32> to vector<8x128xbf16>
    %c0_12 = arith.constant 0 : index
    %c0_13 = arith.constant 0 : index
    %17 = vector.load %arg6[%c0_12, %c0_13] : memref<128x128xbf16, #tpu.memory_space<vmem>>, vector<128x128xbf16>
    %cst_14 = arith.constant dense<0.000000e+00> : vector<8x128xf32>
    %18 = tpu.matmul %16, %17, %cst_14 {dimension_numbers = #tpu.dot_dimension_numbers<[1], [0], [0], [1], [0, 0, 1, 1], [], []>} : vector<8x128xbf16>, vector<128x128xbf16>, vector<8x128xf32> -> vector<8x128xf32>
    %c0_15 = arith.constant 0 : index
    %c0_16 = arith.constant 0 : index
    %19 = vector.load %arg7[%c0_15, %c0_16] : memref<1x128xf32, #tpu.memory_space<vmem>>, vector<1x128xf32>
    %20 = vector.broadcast %19 : vector<1x128xf32> to vector<8x128xf32>
    %21 = arith.addf %18, %20 : vector<8x128xf32>
    %cst_17 = arith.constant dense<0xFF800000> : vector<8xf32>
    %22 = vector.multi_reduction <maximumf>, %21, %cst_17 [1] : vector<8x128xf32> to vector<8xf32>
    %23 = vector.shape_cast %22 : vector<8xf32> to vector<8x1xf32>
    %24 = vector.broadcast %23 : vector<8x1xf32> to vector<8x128xf32>
    %25 = arith.subf %21, %24 : vector<8x128xf32>
    %26 = math.exp %25 : vector<8x128xf32>
    %cst_18 = arith.constant dense<0.000000e+00> : vector<8xf32>
    %27 = vector.multi_reduction <add>, %26, %cst_18 [1] : vector<8x128xf32> to vector<8xf32>
    %28 = vector.shape_cast %27 : vector<8xf32> to vector<8x1xf32>
    %29 = vector.broadcast %28 : vector<8x1xf32> to vector<8x128xf32>
    %30 = arith.divf %26, %29 : vector<8x128xf32>
    %31 = vector.extract_strided_slice %30 {offsets = [0, 0], sizes = [8, 4], strides = [1, 1]} : vector<8x128xf32> to vector<8x4xf32>
    %c0_19 = arith.constant 0 : index
    %c0_20 = arith.constant 0 : index
    %32 = vector.load %arg8[%c0_19, %c0_20] : memref<8x4xf32, #tpu.memory_space<vmem>>, vector<8x4xf32>
    tpu.vector_store %arg8[%c0_19, %c0_20], %31 {strides = array<i32>} : memref<8x4xf32, #tpu.memory_space<vmem>>, vector<8x4xf32>,
    return
  }
  func.func @transform_0(%arg0: i32) -> (i32, i32) {
    %c0_i32 = arith.constant 0 : i32
    %c0_i32_0 = arith.constant 0 : i32
    return %arg0, %c0_i32 : i32, i32
  }
  func.func @transform_1(%arg0: i32) -> (i32, i32) {
    %c0_i32 = arith.constant 0 : i32
    %c0_i32_0 = arith.constant 0 : i32
    %c0_i32_1 = arith.constant 0 : i32
    return %c0_i32, %c0_i32_0 : i32, i32
  }
  func.func @transform_2(%arg0: i32) -> (i32, i32) {
    %c0_i32 = arith.constant 0 : i32
    %c0_i32_0 = arith.constant 0 : i32
    %c0_i32_1 = arith.constant 0 : i32
    return %c0_i32, %c0_i32_0 : i32, i32
  }
  func.func @transform_3(%arg0: i32) -> (i32, i32) {
    %c0_i32 = arith.constant 0 : i32
    %c0_i32_0 = arith.constant 0 : i32
    %c0_i32_1 = arith.constant 0 : i32
    return %c0_i32, %c0_i32_0 : i32, i32
  }
  func.func @transform_4(%arg0: i32) -> (i32, i32) {
    %c0_i32 = arith.constant 0 : i32
    %c0_i32_0 = arith.constant 0 : i32
    %c0_i32_1 = arith.constant 0 : i32
    return %c0_i32, %c0_i32_0 : i32, i32
  }
  func.func @transform_5(%arg0: i32) -> (i32, i32) {
    %c0_i32 = arith.constant 0 : i32
    %c0_i32_0 = arith.constant 0 : i32
    %c0_i32_1 = arith.constant 0 : i32
    return %c0_i32, %c0_i32_0 : i32, i32
  }
  func.func @transform_6(%arg0: i32) -> (i32, i32) {
    %c0_i32 = arith.constant 0 : i32
    %c0_i32_0 = arith.constant 0 : i32
    %c0_i32_1 = arith.constant 0 : i32
    return %c0_i32, %c0_i32_0 : i32, i32
  }
  func.func @transform_7(%arg0: i32) -> (i32, i32) {
    %c0_i32 = arith.constant 0 : i32
    %c0_i32_0 = arith.constant 0 : i32
    return %arg0, %c0_i32 : i32, i32
  }
}

</mosaic_0001>

<bundles_post_ra>
// kernel: tpu_custom_call.1
= control target key start
LH: loop header
LB: loop body
LE: loop exit
PB: predicated region body
PF: predicated region fallthrough
CT: control target
= control target key end

     0   :  { %12 = vsyncpa [#allocation3], 0  ;;  %s731_s0 = inlined_call_operand.hbm [shape: bf16[8,16], index: 0, kind: input, shape index: {}]   ;;  %s732_s1 = inlined_call_operand.hbm [shape: bf16[16,128], index: 1, kind: input, shape index: {}]   ;;  %s733_s2 = inlined_call_operand.vmem [shape: f32[1,128], index: 2, kind: input, shape index: {}]   ;;  %s734_s3 = inlined_call_operand.hbm [shape: bf16[128,128], index: 3, kind: input, shape index: {}]   ;;  %s735_s4 = inlined_call_operand.vmem [shape: f32[1,128], index: 4, kind: input, shape index: {}]   ;;  %s736_s5 = inlined_call_operand.hbm [shape: bf16[128,128], index: 5, kind: input, shape index: {}]   ;;  %s737_s6 = inlined_call_operand.vmem [shape: f32[1,128], index: 6, kind: input, shape index: {}]   ;;  %s738_s7 = inlined_call_operand.vmem [shape: f32[8,4], index: 7, kind: output, shape index: {}]  }
   0x1   :  { %13 = vsyncpa [#allocation5], 0 }
   0x2   :  { %14 = vsyncpa [#allocation8], 0  ;;  %s594_s24 = smov [#allocation4]   ;;  %s500_s28 = scalar_lea.hbm %s732_s1, 128 }
   0x3   :  { %s30_s25 = sshll.u32 %s594_s24, 4  ;;  %p501_p0 = scmp.ne.s32.totalorder %s732_s1, %s500_s28  ;;  %s31_s25 = int_to_ptr.vmem [resolvable:$true] %s30_s25 }
   0x4   :  { %p504_p1 = scmp.lt.u32.totalorder %s500_s28, %s732_s1 }
   0x6   :  { %p506_p2 = pnand %p504_p1, %p501_p0 }
   0x8   :  { %509 = shalt.err (!%p506_p2)
}
   0x9   :  { %s510_s10 = scalar_lea.vmem %s31_s25, 128  ;;  %p515_p4 = scmp.lt.s32.totalorder %s31_s25, %s31_s25 }
   0xa   :  { %p511_p3 = scmp.ne.s32.totalorder %s31_s25, %s510_s10  ;;  %p516_p5 = scmp.lt.s32.totalorder %s510_s10, %s510_s10 }
   0xc   :  { %p517_p6 = por %p516_p5, %p515_p4 }
   0xe   :  { %p518_p7 = pnand %p517_p6, %p511_p3 }
  0x10   :  { %521 = shalt.err (!%p518_p7)
}
  0x11   :  { %s595_s11 = smov 64   ;;  %s596_s12 = smov 4  }
  0x12   :  { %36 = dma.hbm_to_vmem [thread:$0]  %s732_s1, 128, %s31_s25, [#allocation5], %s595_s11, %s595_s11, %s596_s12  }
  0x13   :  { %s597_s15 = smov [#allocation2]   ;;  %s598_s17 = smov [#allocation6]  }
  0x14   :  { %s21_s16 = sshll.u32 %s597_s15, 4  ;;  %s44_s18 = sshll.u32 %s598_s17, 4  ;;  %s22_s16 = int_to_ptr.vmem [resolvable:$true] %s21_s16  ;;  %s45_s18 = int_to_ptr.vmem [resolvable:$true] %s44_s18 }
  0x15   :  { %s522_s21 = scalar_lea.hbm %s731_s0, 64 }
  0x16   :  { %p523_p8 = scmp.ne.s32.totalorder %s731_s0, %s522_s21  ;;  %p526_p9 = scmp.lt.u32.totalorder %s522_s21, %s731_s0 }
  0x18   :  { %p528_p10 = pnand %p526_p9, %p523_p8 }
  0x1a   :  { %531 = shalt.err (!%p528_p10)
}
  0x1b   :  { %s532_s1 = scalar_lea.vmem %s22_s16, 64  ;;  %p537_p12 = scmp.lt.s32.totalorder %s22_s16, %s22_s16 }
  0x1c   :  { %p533_p11 = scmp.ne.s32.totalorder %s22_s16, %s532_s1  ;;  %p538_p13 = scmp.lt.s32.totalorder %s532_s1, %s532_s1 }
  0x1e   :  { %p539_p0 = por %p538_p13, %p537_p12 }
  0x20   :  { %p540_p1 = pnand %p539_p0, %p533_p11 }
  0x22   :  { %543 = shalt.err (!%p540_p1)
}
  0x23   :  { %24 = dma.hbm_to_vmem [thread:$0]  %s731_s0, 64, %s22_s16, [#allocation3]  }
  0x24   :  { %s544_s30 = scalar_lea.hbm %s734_s3, 1024 }
  0x25   :  { %p545_p2 = scmp.ne.s32.totalorder %s734_s3, %s544_s30  ;;  %p548_p3 = scmp.lt.u32.totalorder %s544_s30, %s734_s3 }
  0x27   :  { %p550_p4 = pnand %p548_p3, %p545_p2 }
  0x29   :  { %553 = shalt.err (!%p550_p4)
}
  0x2a   :  { %s554_s14 = scalar_lea.vmem %s45_s18, 1024  ;;  %p559_p6 = scmp.lt.s32.totalorder %s45_s18, %s45_s18 }
  0x2b   :  { %p555_p5 = scmp.ne.s32.totalorder %s45_s18, %s554_s14  ;;  %p560_p7 = scmp.lt.s32.totalorder %s554_s14, %s554_s14 }
  0x2d   :  { %p561_p8 = por %p560_p7, %p559_p6 }
  0x2f   :  { %p562_p9 = pnand %p561_p8, %p555_p5 }
  0x31   :  { %565 = shalt.err (!%p562_p9)
}
  0x32   :  { %50 = dma.hbm_to_vmem [thread:$0]  %s734_s3, 1024, %s45_s18, [#allocation5], %s595_s11, %s595_s11, %s596_s12  }
  0x33   :  { %s599_s16 = smov [#allocation7]   ;;  %s566_s21 = scalar_lea.hbm %s736_s5, 1024 }
  0x34   :  { %s58_s17 = sshll.u32 %s599_s16, 4  ;;  %p567_p10 = scmp.ne.s32.totalorder %s736_s5, %s566_s21  ;;  %s59_s17 = int_to_ptr.vmem [resolvable:$true] %s58_s17 }
  0x35   :  { %p570_p11 = scmp.lt.u32.totalorder %s566_s21, %s736_s5 }
  0x37   :  { %p572_p12 = pnand %p570_p11, %p567_p10 }
  0x39   :  { %575 = shalt.err (!%p572_p12)
}
  0x3a   :  { %s576_s1 = scalar_lea.vmem %s59_s17, 1024  ;;  %p581_p0 = scmp.lt.s32.totalorder %s59_s17, %s59_s17 }
  0x3b   :  { %p577_p13 = scmp.ne.s32.totalorder %s59_s17, %s576_s1  ;;  %p582_p1 = scmp.lt.s32.totalorder %s576_s1, %s576_s1 }
  0x3d   :  { %p583_p2 = por %p582_p1, %p581_p0 }
  0x3f   :  { %p584_p3 = pnand %p583_p2, %p577_p13 }
  0x41   :  { %587 = shalt.err (!%p584_p3)
}
  0x42   :  { %64 = dma.hbm_to_vmem [thread:$0]  %s736_s5, 1024, %s59_s17, [#allocation8], %s595_s11, %s595_s11, %s596_s12  }
  0x43   :  { %588 = dma.done.wait [#allocation3], 64  }
  0x44   :  { %589 = vsyncadd [#allocation3], 4294967232 }
  0x45   :  { %590 = dma.done.wait [#allocation5], 1152  }
  0x46   :  { %591 = vsyncadd [#allocation5], 4294966144 }
  0x47   :  { %592 = dma.done.wait [#allocation8], 1024  }
  0x48   :  { %593 = vsyncadd [#allocation8], 4294966272  ;;  %v600_v0 = vmov 0.0   ;;  %vm601_vm0 = vmmov 0   ;;  %v479_v1 = vld [vmem:[#allocation4] sm:$0xff]   ;;  %vm96_vm1 = vcmask 130048  }
  0x49   :  { %425 = vmatprep.subr.bf16.mxu0 %v600_v0  ;;  %427 = vmatprep.mubr.msk.bf16.mxu0 %vm601_vm0, %v600_v0  ;;  %v80_v2 = vld [vmem:[#allocation2] sm:$0xf]  ;;  %v480_v3 = vld [vmem:[#allocation6] sm:$0xff]   ;;  %v481_v4 = vld [vmem:[#allocation6 + $0x8] sm:$0xff]   ;;  %vm375_vm2 = vcmask 31744  }
  0x4a   :  { %431 = vmatprep.subr.bf16.mxu1 %v600_v0  ;;  %447 = vmatprep.mubr.msk.bf16.mxu1 %vm601_vm0, %v600_v0  ;;  %v482_v5 = vld [vmem:[#allocation6 + $0x10] sm:$0xff]   ;;  %v483_v6 = vld [vmem:[#allocation6 + $0x18] sm:$0xff]   ;;  %v484_v7 = vld [vmem:[#allocation6 + $0x20] sm:$0xff]  }
  0x4b   :  { %426 = vmatpush3.bf16.msra.mxu0 %v479_v1  ;;  %432 = vmatpush3.bf16.msra.mxu1 %v480_v3  ;;  %v485_v8 = vld [vmem:[#allocation6 + $0x28] sm:$0xff]   ;;  %v486_v9 = vld [vmem:[#allocation6 + $0x30] sm:$0xff]   ;;  %v487_v10 = vld [vmem:[#allocation6 + $0x38] sm:$0xff]  }
  0x4c   :  { %451 = vmatprep.subr.bf16.mxu0 %v600_v0  ;;  %433 = vmatprep.subr.bf16.mxu1 %v600_v0  ;;  %v488_v11 = vld [vmem:[#allocation7] sm:$0xff]   ;;  %v489_v12 = vld [vmem:[#allocation7 + $0x8] sm:$0xff]   ;;  %v490_v13 = vld [vmem:[#allocation7 + $0x10] sm:$0xff]  }
  0x4d   :  { %v491_v14 = vld [vmem:[#allocation7 + $0x18] sm:$0xff]   ;;  %v492_v15 = vld [vmem:[#allocation7 + $0x20] sm:$0xff]   ;;  %v493_v16 = vld [vmem:[#allocation7 + $0x28] sm:$0xff]  }
  0x4e   :  { %428 = vmatmul.mubr.msk.bf16.vlgmr.msra.gmra.mrb[0].mxu0 %vm96_vm1, %v80_v2  ;;  %v384_v17 = vld [vmem:[%s733_s2] ss:$0 sm:$0xff]  ;;  %v495_v26 = vld [vmem:[#allocation7 + $0x38] sm:$0xff]  }
  0x4f   :  { %467 = vmatprep.mubr.msk.bf16.mxu0 %vm601_vm0, %v600_v0  ;;  %434 = vmatpush3.bf16.msra.mxu1 %v481_v4  ;;  %v494_v25 = vld [vmem:[#allocation7 + $0x30] sm:$0xff]  }
  0x50   :  { %435 = vmatprep.subr.bf16.mxu1 %v600_v0  ;;  %452 = vmatpush3.bf16.msra.mxu0 %v488_v11  ;;  %v387_v27 = vld [vmem:[%s735_s4] ss:$0 sm:$0xff] }
  0x51   :  { %453 = vmatprep.subr.bf16.mxu0 %v600_v0  ;;  %v396_v35 = vld [vmem:[%s737_s6] ss:$0 sm:$0xff] }
  0x53   :  { %436 = vmatpush3.bf16.msra.mxu1 %v482_v5 }
  0x54   :  { %437 = vmatprep.subr.bf16.mxu1 %v600_v0  ;;  %454 = vmatpush3.bf16.msra.mxu0 %v489_v12 }
  0x55   :  { %455 = vmatprep.subr.bf16.mxu0 %v600_v0 }
  0x57   :  { %438 = vmatpush3.bf16.msra.mxu1 %v483_v6 }
  0x58   :  { %439 = vmatprep.subr.bf16.mxu1 %v600_v0  ;;  %456 = vmatpush3.bf16.msra.mxu0 %v490_v13 }
  0x59   :  { %457 = vmatprep.subr.bf16.mxu0 %v600_v0 }
  0x5b   :  { %440 = vmatpush3.bf16.msra.mxu1 %v484_v7 }
  0x5c   :  { %441 = vmatprep.subr.bf16.mxu1 %v600_v0  ;;  %458 = vmatpush3.bf16.msra.mxu0 %v491_v14 }
  0x5d   :  { %459 = vmatprep.subr.bf16.mxu0 %v600_v0 }
  0x5f   :  { %442 = vmatpush3.bf16.msra.mxu1 %v485_v8 }
  0x60   :  { %443 = vmatprep.subr.bf16.mxu1 %v600_v0  ;;  %460 = vmatpush3.bf16.msra.mxu0 %v492_v15 }
  0x61   :  { %461 = vmatprep.subr.bf16.mxu0 %v600_v0 }
  0x63   :  { %444 = vmatpush3.bf16.msra.mxu1 %v486_v9 }
  0x64   :  { %445 = vmatprep.subr.bf16.mxu1 %v600_v0  ;;  %462 = vmatpush3.bf16.msra.mxu0 %v493_v16 }
  0x65   :  { %463 = vmatprep.subr.bf16.mxu0 %v600_v0 }
  0x67   :  { %446 = vmatpush3.bf16.msra.mxu1 %v487_v10 }
  0x68   :  { %464 = vmatpush3.bf16.msra.mxu0 %v494_v25 }
  0x69   :  { %465 = vmatprep.subr.bf16.mxu0 %v600_v0 }
  0x6c   :  { %466 = vmatpush3.bf16.msra.mxu0 %v495_v26 }
 0x121   :  { %v134_v18 = vpop.f32.mrb[0].mxu0 }
 0x122   :  { %v135_v19 = vadd.f32 %v384_v17, %v134_v18  ;;  %v429_v20 = vpop.f32.mrb[1].mxu0 }
 0x123   :  { %v137_v21 = vpop.f32.mrb[2].mxu0 }
 0x124   :  { %v140_v22 = vmax.f32 %v135_v19, 0.0  ;;  %v430_v23 = vpop.f32.mrb[3].mxu0 }
 0x126   :  { %v141_v24 = vpack.c.bf16 %v140_v22, %v140_v22 }
 0x128   :  { %448 = vmatmul.mubr.bf16.vlgmr.msra.gmra.mrb[0].mxu1 %v141_v24 }
 0x1fb   :  { %v247_v28 = vpop.f32.mrb[0].mxu1 }
 0x1fc   :  { %v248_v29 = vadd.f32 %v387_v27, %v247_v28  ;;  %v449_v30 = vpop.f32.mrb[1].mxu1 }
 0x1fd   :  { %v250_v31 = vpop.f32.mrb[2].mxu1 }
 0x1fe   :  { %v253_v32 = vmax.f32 %v248_v29, 0.0  ;;  %v450_v33 = vpop.f32.mrb[3].mxu1 }
 0x200   :  { %v254_v34 = vpack.c.bf16 %v253_v32, %v253_v32 }
 0x202   :  { %468 = vmatmul.mubr.bf16.vlgmr.msra.gmra.mrb[4].mxu0 %v254_v34 }
 0x2d5   :  { %v360_v36 = vpop.f32.mrb[4].mxu0 }
 0x2d6   :  { %v361_v37 = vadd.f32 %v396_v35, %v360_v36  ;;  %v469_v38 = vpop.f32.mrb[5].mxu0 }
 0x2d7   :  { %v363_v39 = vpop.f32.mrb[6].mxu0 }
 0x2d8   :  { %366 = vmax.xlane.f32.xlu0 %v361_v37  ;;  %v470_v40 = vpop.f32.mrb[7].mxu0 }
 0x365   :  { %v367_v41 = vpop.xlane.xlu0 %366 }
 0x366   :  { %v368_v42 = vsub.f32 %v361_v37, %v367_v41 }
 0x368   :  { %v369_v43 = vmul.f32 1.442695, %v368_v42 }
 0x36a   :  { %496 = vpow2.f32 %v369_v43 }
 0x374   :  { %v497_v44 = vpop.eup %496 }
 0x375   :  { %371 = vadd.xlane.f32.xlu0 %v497_v44 }
 0x402   :  { %v372_v45 = vpop.xlane.xlu0 %371 }
 0x403   :  { %498 = vrcp.f32 %v372_v45 }
 0x40d   :  { %v499_v46 = vpop.eup %498 }
 0x40e   :  { %v374_v47 = vmul.f32 %v499_v46, %v497_v44 }
 0x410   :  { %376 = vst.msk [vmem:[%s738_s7] sm:$0xff] %vm375_vm2, %v374_v47 }
 0x411   :  { %381 = vsyncpa [#allocation3], 1 }
 0x412   :  { %382 = vsyncpa [#allocation5], 1 }
 0x413   :  { %383 = vsyncpa [#allocation8], 1 }

</bundles_post_ra>
